<compile_context>
chip_gen: v6e
topology: v6e:2x2x1
jax: 0.10.0
libtpu: 0.0.40
codegen_flags: <defaults>
</compile_context>

<pallas_src>
import jax
import jax.numpy as jnp
from jax import lax
from jax.experimental import pallas as pl
from jax.experimental.pallas import tpu as pltpu

VOCAB = 27          # bigram vocab size (26 letters + '.')
LANES = 128         # TPU vreg lane width
MAX_TILE_N = 1024   # rows per grid step (f32, 128-lane-padded ~512 B/row)


def _round_up(x, m):
    return (x + m - 1) // m * m


# ---------------------------------------------------------------------------
# General path: exact forward semantics (any x), lane-dense output, N-tiled.
# ---------------------------------------------------------------------------
def _matmul_kernel(x_ref, w_ref, o_ref):
    # x_ref: (tile_n, K) f32; w_ref: (K, 128) f32, cols >= VOCAB are zero.
    # One MXU dot per tile; output tile is a full 128-lane slab -> unmasked vst.
    o_ref[...] = jnp.dot(
        x_ref[...], w_ref[...], preferred_element_type=jnp.float32
    )


def bigram_classifier(x, W):
    """out = x @ W  (matches PyTorch `x @ self.W` exactly)."""
    N, K = x.shape
    Kw, M = W.shape
    assert K == Kw

    # Lane-dense output: pad M -> 128 once in the wrapper (layout plumbing).
    m_pad = _round_up(M, LANES)
    w_pad = jnp.zeros((K, m_pad), W.dtype).at[:, :M].set(W)

    # Tile over N so the pipeline double-buffers x reads / out writes.
    n_pad8 = _round_up(N, 8)
    tile_n = min(MAX_TILE_N, n_pad8)
    n_pad = _round_up(n_pad8, tile_n)
    if n_pad != N:
        x = jnp.zeros((n_pad, K), x.dtype).at[:N, :].set(x)

    out = pl.pallas_call(
        _matmul_kernel,
        out_shape=jax.ShapeDtypeStruct((n_pad, m_pad), jnp.float32),
        grid=(n_pad // tile_n,),
        in_specs=[
            # last dim 27 == full array extent, so (8,128) tiling rule is met.
            pl.BlockSpec((tile_n, K), lambda i: (i, 0)),
            # W: single full block, resident across the whole grid.
            pl.BlockSpec((K, m_pad), lambda i: (0, 0)),
        ],
        out_specs=pl.BlockSpec((tile_n, m_pad), lambda i: (i, 0)),
        compiler_params=pltpu.CompilerParams(
            dimension_semantics=("parallel",),      # megacore on v7x
            vmem_limit_bytes=32 * 1024 * 1024,      # safe on v7x (64 MiB VMEM)
        ),
    )(x, w_pad)
    return out[:N, :M]


# ---------------------------------------------------------------------------
# One-hot fast path: out[i, :] = W[idx[i], :], expressed as an in-kernel
# one-hot (built from int32 indices, never materialized in HBM) fed to the MXU.
# ---------------------------------------------------------------------------
def _onehot_kernel(idx_ref, w_ref, o_ref):
    # idx_ref: (tile_n, 1) int32; w_ref: (128, 128) f32, rows >= VOCAB are zero.
    lanes = lax.broadcasted_iota(jnp.int32, o_ref.shape, 1)   # (tile_n, 128)
    onehot = (lanes == idx_ref[...]).astype(jnp.float32)      # VPU compare
    o_ref[...] = jnp.dot(
        onehot, w_ref[...], preferred_element_type=jnp.float32
    )


def bigram_classifier_onehot(idx, W):
    """Equivalent to one_hot(idx, 27) @ W but only reads 4 B/row of input."""
    (N,) = idx.shape
    K, M = W.shape
    k_pad = _round_up(K, LANES)
    m_pad = _round_up(M, LANES)
    w_pad = jnp.zeros((k_pad, m_pad), W.dtype).at[:K, :M].set(W)

    idx2 = idx.astype(jnp.int32).reshape(N, 1)
    n_pad8 = _round_up(N, 8)
    tile_n = min(MAX_TILE_N, n_pad8)
    n_pad = _round_up(n_pad8, tile_n)
    if n_pad != N:
        idx2 = jnp.zeros((n_pad, 1), jnp.int32).at[:N, :].set(idx2)

    out = pl.pallas_call(
        _onehot_kernel,
        out_shape=jax.ShapeDtypeStruct((n_pad, m_pad), jnp.float32),
        grid=(n_pad // tile_n,),
        in_specs=[
            pl.BlockSpec((tile_n, 1), lambda i: (i, 0)),
            pl.BlockSpec((k_pad, m_pad), lambda i: (0, 0)),
        ],
        out_specs=pl.BlockSpec((tile_n, m_pad), lambda i: (i, 0)),
        compiler_params=pltpu.CompilerParams(
            dimension_semantics=("parallel",),
            vmem_limit_bytes=32 * 1024 * 1024,
        ),
    )(idx2, w_pad)
    return out[:N, :M]


if __name__ == "__main__":
    key = jax.random.PRNGKey(0)
    k_w, k_x = jax.random.split(key)

    # Deterministic parameter init mirroring torch.randn((27, 27)).
    W = jax.random.normal(k_w, (VOCAB, VOCAB), dtype=jnp.float32)

    # Small batch of one-hot encoded characters, as the bigram model expects.
    batch = 8
    idx = jax.random.randint(k_x, (batch,), 0, VOCAB)
    x = jax.nn.one_hot(idx, VOCAB, dtype=jnp.float32)  # (8, 27)

    ref = x @ W

    # General matmul path (exact module semantics for arbitrary x).
    out = jax.block_until_ready(bigram_classifier(x, W))
    assert out.shape == (batch, VOCAB)
    assert jnp.allclose(out, ref, atol=1e-5, rtol=1e-5)

    # One-hot fast path (index -> W-row gather expressed as in-kernel one-hot).
    out_fast = jax.block_until_ready(bigram_classifier_onehot(idx, W))
    assert out_fast.shape == (batch, VOCAB)
    assert jnp.allclose(out_fast, ref, atol=1e-5, rtol=1e-5)

    print("KERNEL_OK")
</pallas_src>

<mosaic_0001>
module attributes {stable_mosaic.version = 11 : i64} {
  func.func @_matmul_kernel(%arg0: i32, %arg1: memref<8x27xf32, #tpu.memory_space<vmem>>, %arg2: memref<27x128xf32, #tpu.memory_space<vmem>>, %arg3: memref<8x128xf32, #tpu.memory_space<vmem>>) attributes {dimension_semantics = [#tpu.dimension_semantics<parallel>], iteration_bounds = array<i64: 1>, scalar_prefetch = 0 : i64, scratch_operands = 0 : i64, tpu.core_type = #tpu.core_type<tc>, window_params = [{transform_indices = @transform_0, window_bounds = array<i64: 8, 27>}, {pipeline_mode = #tpu.pipeline_mode<synchronous>, transform_indices = @transform_1, window_bounds = array<i64: 27, 128>}, {transform_indices = @transform_2, window_bounds = array<i64: 8, 128>}]} {
    %c0 = arith.constant 0 : index
    %c0_0 = arith.constant 0 : index
    %0 = vector.load %arg1[%c0, %c0_0] : memref<8x27xf32, #tpu.memory_space<vmem>>, vector<8x27xf32>
    %c0_1 = arith.constant 0 : index
    %c0_2 = arith.constant 0 : index
    %1 = vector.load %arg2[%c0_1, %c0_2] : memref<27x128xf32, #tpu.memory_space<vmem>>, vector<27x128xf32>
    %cst = arith.constant dense<0.000000e+00> : vector<8x128xf32>
    %2 = tpu.matmul %0, %1, %cst {dimension_numbers = #tpu.dot_dimension_numbers<[1], [0], [0], [1], [0, 0, 1, 1], [], []>} : vector<8x27xf32>, vector<27x128xf32>, vector<8x128xf32> -> vector<8x128xf32>
    %c0_3 = arith.constant 0 : index
    %c0_4 = arith.constant 0 : index
    %3 = vector.load %arg3[%c0_3, %c0_4] : memref<8x128xf32, #tpu.memory_space<vmem>>, vector<8x128xf32>
    tpu.vector_store %arg3[%c0_3, %c0_4], %2 {strides = array<i32>} : memref<8x128xf32, #tpu.memory_space<vmem>>, vector<8x128xf32>,
    return
  }
  func.func @transform_0(%arg0: i32) -> (i32, i32) {
    %c0_i32 = arith.constant 0 : i32
    %c0_i32_0 = arith.constant 0 : i32
    return %arg0, %c0_i32 : i32, i32
  }
  func.func @transform_1(%arg0: i32) -> (i32, i32) {
    %c0_i32 = arith.constant 0 : i32
    %c0_i32_0 = arith.constant 0 : i32
    %c0_i32_1 = arith.constant 0 : i32
    return %c0_i32, %c0_i32_0 : i32, i32
  }
  func.func @transform_2(%arg0: i32) -> (i32, i32) {
    %c0_i32 = arith.constant 0 : i32
    %c0_i32_0 = arith.constant 0 : i32
    return %arg0, %c0_i32 : i32, i32
  }
}

</mosaic_0001>

<bundles_post_ra>
// kernel: tpu_custom_call.1
= control target key start
LH: loop header
LB: loop body
LE: loop exit
PB: predicated region body
PF: predicated region fallthrough
CT: control target
= control target key end

     0   :  { %7 = vsyncpa [#allocation3], 0  ;;  %s260_s0 = inlined_call_operand.hbm [shape: f32[8,27], index: 0, kind: input, shape index: {}]   ;;  %s261_s1 = inlined_call_operand.hbm [shape: f32[27,128], index: 1, kind: input, shape index: {}]   ;;  %s262_s2 = inlined_call_operand.hbm [shape: f32[8,128], index: 2, kind: output, shape index: {}]  }
   0x1   :  { %8 = vsyncpa [#allocation6], 0 }
   0x2   :  { %9 = vsyncpa [#allocation4], 0  ;;  %s229_s9 = smov [#allocation2]   ;;  %s230_s11 = smov [#allocation5]  }
   0x3   :  { %s16_s10 = sshll.u32 %s229_s9, 4  ;;  %s25_s12 = sshll.u32 %s230_s11, 4  ;;  %s17_s10 = int_to_ptr.vmem [resolvable:$true] %s16_s10  ;;  %s26_s12 = int_to_ptr.vmem [resolvable:$true] %s25_s12 }
   0x4   :  { %s171_s13 = scalar_lea.vmem %s17_s10, 128  ;;  %p176_p1 = scmp.lt.s32.totalorder %s17_s10, %s17_s10 }
   0x5   :  { %p172_p0 = scmp.ne.s32.totalorder %s17_s10, %s171_s13  ;;  %p177_p2 = scmp.lt.s32.totalorder %s171_s13, %s171_s13 }
   0x7   :  { %p178_p3 = por %p177_p2, %p176_p1 }
   0x9   :  { %p179_p4 = pnand %p178_p3, %p172_p0 }
   0xb   :  { %182 = shalt.err (!%p179_p4)
}
   0xc   :  { %19 = dma.hbm_to_vmem [thread:$0]  %s260_s0, 128, %s17_s10, [#allocation3]  }
   0xd   :  { %s191_s16 = scalar_lea.vmem %s26_s12, 512  ;;  %p196_p6 = scmp.lt.s32.totalorder %s26_s12, %s26_s12 }
   0xe   :  { %p192_p5 = scmp.ne.s32.totalorder %s26_s12, %s191_s16  ;;  %p197_p7 = scmp.lt.s32.totalorder %s191_s16, %s191_s16 }
  0x10   :  { %p198_p8 = por %p197_p7, %p196_p6 }
  0x12   :  { %p199_p9 = pnand %p198_p8, %p192_p5 }
  0x14   :  { %202 = shalt.err (!%p199_p9)
}
  0x15   :  { %s231_s17 = smov 128   ;;  %s232_s18 = smov 8  }
  0x16   :  { %31 = dma.hbm_to_vmem [thread:$0]  %s261_s1, 512, %s26_s12, [#allocation6], %s231_s17, %s231_s17, %s232_s18  }
  0x17   :  { %223 = dma.done.wait [#allocation3], 128  }
  0x18   :  { %224 = vsyncadd [#allocation3], 4294967168 }
  0x19   :  { %225 = dma.done.wait [#allocation6], 512  }
  0x1a   :  { %226 = vsyncadd [#allocation6], 4294966784  ;;  %v233_v0 = vmov 0.0   ;;  %vm234_vm0 = vmmov 0   ;;  %vm47_vm1 = vcmask 1042432   ;;  %v41_v2 = vld [vmem:[#allocation5 + $0x10] sm:$0xff] }
  0x1b   :  { %145 = vmatprep.subr.mxu0 %v233_v0  ;;  %153 = vmatprep.mubr.msk.f32.mxu0 %vm234_vm0, %v233_v0  ;;  %v42_v1 = vld [vmem:[#allocation5 + $0x18] sm:$0x7]  ;;  %v40_v3 = vld [vmem:[#allocation5 + $0x8] sm:$0xff]  ;;  %v39_v4 = vld [vmem:[#allocation5] sm:$0xff]  ;;  %vm43_vm2 = vcmask 220160   ;;  %s235_s0 = smov [#allocation7]  }
  0x1c   :  { %146 = vmatpush3.msk.msra.mxu0 %vm47_vm1, %v42_v1  ;;  %v38_v5 = vld [vmem:[#allocation2] sm:$0xff]  ;;  %s128_s1 = sshll.u32 %s235_s0, 4  ;;  %s129_s1 = int_to_ptr.vmem [resolvable:$true] %s128_s1 }
  0x1d   :  { %147 = vmatprep.subr.mxu0 %v233_v0  ;;  %s203_s21 = scalar_lea.vmem %s129_s1, 128  ;;  %p208_p11 = scmp.lt.s32.totalorder %s129_s1, %s129_s1 }
  0x1e   :  { %148 = vmatpush3.msra.mxu0 %v41_v2  ;;  %p204_p10 = scmp.ne.s32.totalorder %s129_s1, %s203_s21  ;;  %p209_p12 = scmp.lt.s32.totalorder %s203_s21, %s203_s21 }
  0x1f   :  { %149 = vmatprep.subr.mxu0 %v233_v0 }
  0x20   :  { %150 = vmatpush3.msra.mxu0 %v40_v3  ;;  %p210_p13 = por %p209_p12, %p208_p11 }
  0x21   :  { %151 = vmatprep.subr.mxu0 %v233_v0 }
  0x22   :  { %152 = vmatpush3.msra.mxu0 %v39_v4  ;;  %p211_p0 = pnand %p210_p13, %p204_p10 }
  0x23   :  { %154 = vmatmul.mubr.msk.f32.vlgmr.msra.gmra.mxu0 %vm43_vm2, %v38_v5 }
  0xe3   :  { %v117_v6 = vpop.f32.mrf.mxu0 }
  0xe4   :  { %121 = vst [vmem:[#allocation7] sm:$0xff] %v117_v6 }
  0xe5   :  { %v155_v7 = vpop.f32.mrf.mxu0 }
  0xe6   :  { %214 = shalt.err (!%p211_p0)
}
  0xe7   :  { %131 = dma.vmem_to_hbm [thread:$0]  %s129_s1, 128, %s262_s2, [#allocation4]  }
  0xe8   :  { %227 = dma.done.wait [#allocation4], 128  }
  0xe9   :  { %228 = vsyncadd [#allocation4], 4294967168 }
  0xea   :  { %135 = vsyncpa [#allocation3], 1 }
  0xeb   :  { %136 = vsyncpa [#allocation6], 1 }
  0xec   :  { %137 = vsyncpa [#allocation4], 1 }

</bundles_post_ra>
